<compile_context>
chip_gen: v6e
topology: v6e:2x2x1
jax: 0.10.0
libtpu: 0.0.40
codegen_flags: <defaults>
</compile_context>

<pallas_src>
import functools

import jax
import jax.numpy as jnp
from jax.experimental import pallas as pl
from jax.experimental.pallas import tpu as pltpu

_LANES = 128
_ACC_ROWS = 32                             # partial-sum block rows (reduction ILP)
_BLOCK_BYTES_PER_INPUT = 4 * 1024 * 1024   # ~4 MiB per input per grid step
_MIN_GRID_BLOCKS = 4                       # keep pipelining / megacore split alive
_VMEM_LIMIT_BYTES = 48 * 1024 * 1024       # explicit scoped-VMEM limit (fits v7x 64 MiB)


def _block_partial_sum(x):
    # Reduce a (block_rows, 128) f32 tile to (32, 128): block_rows/32 groups
    # summed with 32 independent accumulator rows per lane column (vs. a single
    # serial vadd chain with an (8,128) accumulator).
    return x.reshape(-1, _ACC_ROWS, _LANES).sum(axis=0)


def _tonemapped_rel_mse_kernel(im_ref, ref_ref, out_ref, *, eps, rows_total,
                               block_rows, mask_rows, approx_recip):
    # Load in native dtype, upcast in-VMEM (free relative to the HBM stream).
    im = jnp.maximum(im_ref[...].astype(jnp.float32), 0.0)
    rf = jnp.maximum(ref_ref[...].astype(jnp.float32), 0.0)

    # Folded form of (tm(im) - tm(rf))^2 / (tm(rf)^2 + eps) with tm(x) = x/(1+x):
    #   (im - rf)^2 / ((1+im)^2 * (rf^2 + eps*(1+rf)^2))
    # -> one divide per element instead of three. Can overflow f32 only for
    # |x| ~ 1e19 inputs (far outside any HDR range).
    diff = im - rf
    one_p_im = 1.0 + im
    one_p_rf = 1.0 + rf
    denom = (one_p_im * one_p_im) * (rf * rf + eps * (one_p_rf * one_p_rf))
    num = diff * diff
    if approx_recip:
        # EUP-slot approximate reciprocal (v7x VALU headroom); ~1e-3 rel error.
        loss = num * pl.reciprocal(denom, approx=True)
    else:
        loss = num / denom

    # NOTE: verified small-VMEM elementwise chain; if a bundle dump ever shows
    # Mosaic materializing full (block_rows,128) temporaries, sub-chunk the
    # loss computation with lax.fori_loop(..., unroll=True) over ~512-row slices.
    if mask_rows:
        i = pl.program_id(0)
        is_last = i == pl.num_programs(0) - 1

        # Interior blocks: no masking ops at all on the hot path.
        @pl.when(jnp.logical_not(is_last))
        def _():
            out_ref[...] = _block_partial_sum(loss)

        # Last (ragged) block: zero out-of-bounds rows. Select-based where
        # guarantees garbage (even NaN/Inf) in undefined rows cannot leak.
        @pl.when(is_last)
        def _():
            row = (jax.lax.broadcasted_iota(jnp.int32, loss.shape, 0)
                   + i * block_rows)
            out_ref[...] = _block_partial_sum(
                jnp.where(row < rows_total, loss, 0.0))
    else:
        out_ref[...] = _block_partial_sum(loss)


def tonemapped_relative_mse(im, ref, eps=0.01, *, approx_recip=False):
    """Computes 0.5 * mean((tm(im) - tm(ref))^2 / (tm(ref)^2 + eps))."""
    assert im.shape == ref.shape, "im and ref must have the same shape"
    count = im.size  # mean is over the ORIGINAL number of elements

    # Flatten in native dtype (no wrapper upcast: half-precision inputs stream
    # half the HBM bytes; the cast happens in-VMEM inside the kernel).
    flat_im = im.reshape(-1)
    flat_ref = ref.reshape(-1)

    # Lane-align only when needed. Zero padding is harmless: tm(0)=0 for both
    # inputs so padded elements contribute exactly 0; the mean still divides
    # by `count`.
    if count % _LANES != 0:
        pad = _LANES - count % _LANES
        flat_im = jnp.pad(flat_im, (0, pad))
        flat_ref = jnp.pad(flat_ref, (0, pad))
    rows_total = flat_im.size // _LANES
    im2d = flat_im.reshape(rows_total, _LANES)
    ref2d = flat_ref.reshape(rows_total, _LANES)

    # Block sizing:
    #  * byte budget ~4 MiB per input per block (8192 rows f32 / 16384 bf16),
    #  * but no more than ~rows_total/4 so medium inputs keep >= 4 grid steps,
    #  * rounded to a multiple of 32 rows (covers f32/bf16/int8 sublane packing
    #    and the (32,128) accumulator block).
    max_itemsize = max(im2d.dtype.itemsize, ref2d.dtype.itemsize)
    budget_rows = _BLOCK_BYTES_PER_INPUT // (max_itemsize * _LANES)
    quarter_rows = pl.cdiv(rows_total, _MIN_GRID_BLOCKS)
    quarter_rows = ((quarter_rows + _ACC_ROWS - 1) // _ACC_ROWS) * _ACC_ROWS
    block_rows = max(_ACC_ROWS, min(budget_rows, quarter_rows))

    num_blocks = pl.cdiv(rows_total, block_rows)
    mask_rows = (rows_total % block_rows) != 0

    kernel = functools.partial(
        _tonemapped_rel_mse_kernel, eps=float(eps), rows_total=rows_total,
        block_rows=block_rows, mask_rows=mask_rows, approx_recip=approx_recip)

    partials = pl.pallas_call(
        kernel,
        out_shape=jax.ShapeDtypeStruct((num_blocks * _ACC_ROWS, _LANES),
                                       jnp.float32),
        grid_spec=pltpu.PrefetchScalarGridSpec(
            num_scalar_prefetch=0,
            grid=(num_blocks,),
            in_specs=[
                # NOTE: pipeline_mode=pl.Buffered(3) is a possible <5% win but
                # multiplies input VMEM footprint 1.5x; skipped to keep v7x
                # headroom at the 4 MiB block size.
                pl.BlockSpec((block_rows, _LANES), lambda i: (i, 0)),
                pl.BlockSpec((block_rows, _LANES), lambda i: (i, 0)),
            ],
            out_specs=pl.BlockSpec((_ACC_ROWS, _LANES), lambda i: (i, 0)),
        ),
        # Each grid step writes its own disjoint partial-sum block, so the row
        # axis is fully parallel (lets v7x's 2 TensorCores split the stream).
        compiler_params=pltpu.CompilerParams(
            dimension_semantics=("parallel",),
            vmem_limit_bytes=_VMEM_LIMIT_BYTES,
        ),
    )(im2d, ref2d)

    # Tiny epilogue: reduce num_blocks*32*128 partials and apply 0.5 / mean.
    return 0.5 * jnp.sum(partials) / jnp.float32(count)


def _reference(im, ref, eps=0.01):
    def tm(x):
        x = jnp.maximum(x.astype(jnp.float32), 0.0)
        return x / (1.0 + x)

    im_t = tm(im)
    ref_t = tm(ref)
    mse = (im_t - ref_t) ** 2
    loss = mse / (ref_t ** 2 + eps)
    return 0.5 * jnp.mean(loss)


if __name__ == "__main__":
    key = jax.random.PRNGKey(0)
    cases = [
        ((2, 4, 16, 16), jnp.float32),    # lane-aligned, single block
        ((2, 3, 20, 20), jnp.float32),    # 2400 elems: lane padding + masked tail rows
        ((2, 8, 128, 160), jnp.float32),  # 327680 elems: 4-block grid, no masking
        ((2, 8, 128, 160), jnp.bfloat16), # bf16 inputs: half the HBM bytes streamed
    ]
    for shape, dtype in cases:
        key, k1, k2 = jax.random.split(key, 3)
        im = (jax.random.normal(k1, shape, dtype=jnp.float32) * 2.0 + 0.5).astype(dtype)
        ref = (jax.random.normal(k2, shape, dtype=jnp.float32) * 2.0 + 0.5).astype(dtype)

        out = jax.block_until_ready(tonemapped_relative_mse(im, ref, eps=0.01))
        expected = _reference(im, ref, eps=0.01)
        assert jnp.allclose(out, expected, rtol=1e-5, atol=1e-6), (
            shape, dtype, out, expected)

    print("KERNEL_OK")
</pallas_src>

<mosaic_0001>
module attributes {stable_mosaic.version = 11 : i64} {
  func.func @_tonemapped_rel_mse_kernel(%arg0: i32, %arg1: memref<32x128xf32, #tpu.memory_space<vmem>>, %arg2: memref<32x128xf32, #tpu.memory_space<vmem>>, %arg3: memref<32x128xf32, #tpu.memory_space<vmem>>) attributes {dimension_semantics = [#tpu.dimension_semantics<parallel>], iteration_bounds = array<i64: 1>, scalar_prefetch = 0 : i64, scratch_operands = 0 : i64, tpu.core_type = #tpu.core_type<tc>, window_params = [{transform_indices = @transform_0, window_bounds = array<i64: 32, 128>}, {transform_indices = @transform_1, window_bounds = array<i64: 32, 128>}, {transform_indices = @transform_2, window_bounds = array<i64: 32, 128>}]} {
    %c0 = arith.constant 0 : index
    %c0_0 = arith.constant 0 : index
    %0 = vector.load %arg1[%c0, %c0_0] : memref<32x128xf32, #tpu.memory_space<vmem>>, vector<32x128xf32>
    %cst = arith.constant 0.000000e+00 : f32
    %1 = vector.broadcast %cst : f32 to vector<32x128xf32>
    %2 = arith.maximumf %0, %1 : vector<32x128xf32>
    %c0_1 = arith.constant 0 : index
    %c0_2 = arith.constant 0 : index
    %3 = vector.load %arg2[%c0_1, %c0_2] : memref<32x128xf32, #tpu.memory_space<vmem>>, vector<32x128xf32>
    %cst_3 = arith.constant 0.000000e+00 : f32
    %4 = vector.broadcast %cst_3 : f32 to vector<32x128xf32>
    %5 = arith.maximumf %3, %4 : vector<32x128xf32>
    %6 = arith.subf %2, %5 : vector<32x128xf32>
    %cst_4 = arith.constant 1.000000e+00 : f32
    %7 = vector.broadcast %cst_4 : f32 to vector<32x128xf32>
    %8 = arith.addf %7, %2 : vector<32x128xf32>
    %cst_5 = arith.constant 1.000000e+00 : f32
    %9 = vector.broadcast %cst_5 : f32 to vector<32x128xf32>
    %10 = arith.addf %9, %5 : vector<32x128xf32>
    %11 = arith.mulf %8, %8 : vector<32x128xf32>
    %12 = arith.mulf %5, %5 : vector<32x128xf32>
    %13 = arith.mulf %10, %10 : vector<32x128xf32>
    %cst_6 = arith.constant 0.00999999977 : f32
    %14 = vector.broadcast %cst_6 : f32 to vector<32x128xf32>
    %15 = arith.mulf %14, %13 : vector<32x128xf32>
    %16 = arith.addf %12, %15 : vector<32x128xf32>
    %17 = arith.mulf %11, %16 : vector<32x128xf32>
    %18 = arith.mulf %6, %6 : vector<32x128xf32>
    %19 = arith.divf %18, %17 : vector<32x128xf32>
    %c0_i32 = arith.constant 0 : i32
    %20 = arith.cmpi eq, %arg0, %c0_i32 : i32
    %true = arith.constant true
    %21 = arith.xori %20, %true : i1
    %22 = arith.extui %21 : i1 to i32
    %c0_i32_7 = arith.constant 0 : i32
    %23 = arith.cmpi ne, %22, %c0_i32_7 : i32
    scf.if %23 {
      %26 = vector.shape_cast %19 : vector<32x128xf32> to vector<1x32x128xf32>
      %cst_9 = arith.constant dense<0.000000e+00> : vector<32x128xf32>
      %27 = vector.multi_reduction <add>, %26, %cst_9 [0] : vector<1x32x128xf32> to vector<32x128xf32>
      %c0_10 = arith.constant 0 : index
      %c0_11 = arith.constant 0 : index
      %28 = vector.load %arg3[%c0_10, %c0_11] : memref<32x128xf32, #tpu.memory_space<vmem>>, vector<32x128xf32>
      tpu.vector_store %arg3[%c0_10, %c0_11], %27 {strides = array<i32>} : memref<32x128xf32, #tpu.memory_space<vmem>>, vector<32x128xf32>,
    } else {
    }
    %24 = arith.extui %20 : i1 to i32
    %c0_i32_8 = arith.constant 0 : i32
    %25 = arith.cmpi ne, %24, %c0_i32_8 : i32
    scf.if %25 {
      %26 = tpu.iota {dimensions = array<i32: 0>} : vector<32x128xi32>
      %c32_i32 = arith.constant 32 : i32
      %27 = arith.muli %arg0, %c32_i32 : i32
      %28 = vector.broadcast %27 : i32 to vector<32x128xi32>
      %29 = arith.addi %26, %28 : vector<32x128xi32>
      %c16_i32 = arith.constant 16 : i32
      %30 = vector.broadcast %c16_i32 : i32 to vector<32x128xi32>
      %31 = arith.cmpi slt, %29, %30 : vector<32x128xi32>
      %cst_9 = arith.constant 0.000000e+00 : f32
      %32 = vector.broadcast %cst_9 : f32 to vector<32x128xf32>
      %33 = arith.select %31, %19, %32 : vector<32x128xi1>, vector<32x128xf32>
      %34 = vector.shape_cast %33 : vector<32x128xf32> to vector<1x32x128xf32>
      %cst_10 = arith.constant dense<0.000000e+00> : vector<32x128xf32>
      %35 = vector.multi_reduction <add>, %34, %cst_10 [0] : vector<1x32x128xf32> to vector<32x128xf32>
      %c0_11 = arith.constant 0 : index
      %c0_12 = arith.constant 0 : index
      %36 = vector.load %arg3[%c0_11, %c0_12] : memref<32x128xf32, #tpu.memory_space<vmem>>, vector<32x128xf32>
      tpu.vector_store %arg3[%c0_11, %c0_12], %35 {strides = array<i32>} : memref<32x128xf32, #tpu.memory_space<vmem>>, vector<32x128xf32>,
    } else {
    }
    return
  }
  func.func @transform_0(%arg0: i32) -> (i32, i32) {
    %c0_i32 = arith.constant 0 : i32
    %c0_i32_0 = arith.constant 0 : i32
    return %arg0, %c0_i32 : i32, i32
  }
  func.func @transform_1(%arg0: i32) -> (i32, i32) {
    %c0_i32 = arith.constant 0 : i32
    %c0_i32_0 = arith.constant 0 : i32
    return %arg0, %c0_i32 : i32, i32
  }
  func.func @transform_2(%arg0: i32) -> (i32, i32) {
    %c0_i32 = arith.constant 0 : i32
    %c0_i32_0 = arith.constant 0 : i32
    return %arg0, %c0_i32 : i32, i32
  }
}

</mosaic_0001>

<bundles_post_ra>
// kernel: tpu_custom_call.1
= control target key start
LH: loop header
LB: loop body
LE: loop exit
PB: predicated region body
PF: predicated region fallthrough
CT: control target
= control target key end

     0   :  { %7 = vsyncpa [#allocation3], 0  ;;  %s280_s0 = inlined_call_operand.hbm [shape: f32[16,128], index: 0, kind: input, shape index: {}]   ;;  %s281_s1 = inlined_call_operand.hbm [shape: f32[16,128], index: 1, kind: input, shape index: {}]   ;;  %s282_s2 = inlined_call_operand.hbm [shape: f32[32,128], index: 2, kind: output, shape index: {}]  }
   0x1   :  { %8 = vsyncpa [#allocation6], 0 }
   0x2   :  { %9 = vsyncpa [#allocation4], 0 }
   0x3   :  { %14 = vsyncadd [#allocation3], 256  ;;  %s241_s9 = smov [#allocation2]  }
   0x4   :  { %s15_s10 = sshll.u32 %s241_s9, 4  ;;  %s16_s10 = int_to_ptr.vmem [resolvable:$true] %s15_s10 }
   0x5   :  { %s183_s11 = scalar_lea.vmem %s16_s10, 256  ;;  %s187_s12 = scalar_lea.vmem %s16_s10, 512 }
   0x6   :  { %p184_p0 = scmp.ne.s32.totalorder %s16_s10, %s183_s11  ;;  %p188_p1 = scmp.lt.s32.totalorder %s16_s10, %s16_s10 }
   0x7   :  { %p189_p2 = scmp.lt.s32.totalorder %s187_s12, %s183_s11 }
   0x9   :  { %p190_p3 = por %p189_p2, %p188_p1 }
   0xb   :  { %p191_p4 = pnand %p190_p3, %p184_p0 }
   0xd   :  { %194 = shalt.err (!%p191_p4)
}
   0xe   :  { %s242_s13 = smov 128   ;;  %s243_s14 = smov 8  }
   0xf   :  { %21 = dma.hbm_to_vmem [thread:$0]  %s280_s0, 256, %s16_s10, [#allocation3], %s242_s13, %s242_s13, %s243_s14  }
  0x10   :  { %26 = vsyncadd [#allocation6], 256  ;;  %s244_s17 = smov [#allocation5]  }
  0x11   :  { %s27_s18 = sshll.u32 %s244_s17, 4  ;;  %s28_s18 = int_to_ptr.vmem [resolvable:$true] %s27_s18 }
  0x12   :  { %s203_s19 = scalar_lea.vmem %s28_s18, 256  ;;  %s207_s20 = scalar_lea.vmem %s28_s18, 512 }
  0x13   :  { %p204_p5 = scmp.ne.s32.totalorder %s28_s18, %s203_s19  ;;  %p208_p6 = scmp.lt.s32.totalorder %s28_s18, %s28_s18 }
  0x14   :  { %p209_p7 = scmp.lt.s32.totalorder %s207_s20, %s203_s19 }
  0x16   :  { %p210_p8 = por %p209_p7, %p208_p6 }
  0x18   :  { %p211_p9 = pnand %p210_p8, %p204_p5 }
  0x1a   :  { %214 = shalt.err (!%p211_p9)
}
  0x1b   :  { %33 = dma.hbm_to_vmem [thread:$0]  %s281_s1, 256, %s28_s18, [#allocation6], %s242_s13, %s242_s13, %s243_s14  }
  0x1c   :  { %235 = dma.done.wait [#allocation3], 512  }
  0x1d   :  { %236 = vsyncadd [#allocation3], 4294966784 }
  0x1e   :  { %237 = dma.done.wait [#allocation6], 512  }
  0x1f   :  { %238 = vsyncadd [#allocation6], 4294966784  ;;  %v245_v0 = vmov 0.0   ;;  %v40_v1 = vld [vmem:[#allocation2] sm:$0xff]  ;;  %v41_v3 = vld [vmem:[#allocation2 + $0x8] sm:$0xff]  ;;  %s246_s0 = smov [#allocation7]  }
  0x20   :  { %145 = vst [vmem:[#allocation7 + $0x10] sm:$0xff] %v245_v0  ;;  %146 = vst [vmem:[#allocation7 + $0x18] sm:$0xff] %v245_v0  ;;  %v48_v2 = vld [vmem:[#allocation5] sm:$0xff]  ;;  %v44_v4 = vmax.f32 %v40_v1, 0.0  ;;  %v45_v6 = vmax.f32 %v41_v3, 0.0  ;;  %v49_v7 = vld [vmem:[#allocation5 + $0x8] sm:$0xff] }
  0x21   :  { %v52_v5 = vmax.f32 %v48_v2, 0.0  ;;  %v53_v8 = vmax.f32 %v49_v7, 0.0  ;;  %s152_s1 = sshll.u32 %s246_s0, 4  ;;  %s153_s1 = int_to_ptr.vmem [resolvable:$true] %s152_s1 }
  0x22   :  { %v60_v9 = vadd.f32 1.0, %v44_v4  ;;  %v61_v11 = vadd.f32 1.0, %v45_v6  ;;  %s215_s23 = scalar_lea.vmem %s153_s1, 512  ;;  %p220_p11 = scmp.lt.s32.totalorder %s153_s1, %s153_s1 }
  0x23   :  { %v64_v10 = vadd.f32 1.0, %v52_v5  ;;  %v65_v12 = vadd.f32 1.0, %v53_v8  ;;  %v72_v13 = vmul.f32 %v52_v5, %v52_v5  ;;  %v73_v15 = vmul.f32 %v53_v8, %v53_v8  ;;  %p216_p10 = scmp.ne.s32.totalorder %s153_s1, %s215_s23  ;;  %p221_p12 = scmp.lt.s32.totalorder %s215_s23, %s215_s23 }
  0x24   :  { %v68_v17 = vmul.f32 %v60_v9, %v60_v9  ;;  %v69_v19 = vmul.f32 %v61_v11, %v61_v11  ;;  %v56_v25 = vsub.f32 %v44_v4, %v52_v5  ;;  %v57_v26 = vsub.f32 %v45_v6, %v53_v8 }
  0x25   :  { %v76_v14 = vmul.f32 %v64_v10, %v64_v10  ;;  %v77_v16 = vmul.f32 %v65_v12, %v65_v12  ;;  %p222_p13 = por %p221_p12, %p220_p11 }
  0x26   :  { %v92_v27 = vmul.f32 %v56_v25, %v56_v25  ;;  %v93_v28 = vmul.f32 %v57_v26, %v57_v26 }
  0x27   :  { %v80_v18 = vmul.f32 0.01, %v76_v14  ;;  %v81_v20 = vmul.f32 0.01, %v77_v16  ;;  %p223_p0 = pnand %p222_p13, %p216_p10 }
  0x29   :  { %v84_v21 = vadd.f32 %v80_v18, %v72_v13  ;;  %v85_v22 = vadd.f32 %v81_v20, %v73_v15 }
  0x2b   :  { %v88_v23 = vmul.f32 %v84_v21, %v68_v17  ;;  %v89_v24 = vmul.f32 %v85_v22, %v69_v19 }
  0x2d   :  { %171 = vrcp.f32 %v88_v23 }
  0x2e   :  { %173 = vrcp.f32 %v89_v24 }
  0x3a   :  { %v172_v29 = vpop.eup %171 }
  0x3b   :  { %v174_v30 = vpop.eup %173  ;;  %v97_v31 = vmul.f32 %v172_v29, %v92_v27 }
  0x3c   :  { %v99_v32 = vmul.f32 %v174_v30, %v93_v28 }
  0x3d   :  { %143 = vst [vmem:[#allocation7] sm:$0xff] %v97_v31 }
  0x3e   :  { %144 = vst [vmem:[#allocation7 + $0x8] sm:$0xff] %v99_v32 }
  0x3f   :  { %226 = shalt.err (!%p223_p0)
}
  0x40   :  { %158 = dma.vmem_to_hbm [thread:$0]  %s153_s1, 512, %s282_s2, [#allocation4], %s242_s13, %s242_s13, %s243_s14  }
  0x41   :  { %239 = dma.done.wait [#allocation4], 512  }
  0x42   :  { %240 = vsyncadd [#allocation4], 4294966784 }
  0x43   :  { %162 = vsyncpa [#allocation3], 1 }
  0x44   :  { %163 = vsyncpa [#allocation6], 1 }
  0x45   :  { %164 = vsyncpa [#allocation4], 1 }

</bundles_post_ra>
